<compile_context>
chip_gen: v6e
topology: v6e:2x2x1
jax: 0.10.0
libtpu: 0.0.40
codegen_flags: <defaults>
</compile_context>

<pallas_src>
import functools

import jax
import jax.numpy as jnp
from jax.experimental import pallas as pl
from jax.experimental.pallas import tpu as pltpu

INPUT_DIM = 4
SEQ_LEN = 10
FLAT = INPUT_DIM * SEQ_LEN  # 40
H1, H2, Z = 128, 64, 32
TB_TARGET = 4096  # rows per batch tile (multiple of 8 for f32 sublanes)


def _round_up(n, m):
    return ((n + m - 1) // m) * m


def _ae_kernel(x_ref,
               w1_ref, b1_ref, w2_ref, b2_ref,
               w34_ref, b34_ref,
               w5_ref, b5_ref, w6_ref, b6_ref,
               out_ref):
    wdt = w1_ref.dtype  # bf16 in production, f32 for the verification path

    # Cast the activation exactly once per layer; all dots accumulate in f32 on the MXU.
    h = x_ref[...].astype(wdt)

    # ----- encoder -----
    h = jnp.dot(h, w1_ref[...], preferred_element_type=jnp.float32) + b1_ref[...]
    h = jnp.maximum(h, 0.0).astype(wdt)
    h = jnp.dot(h, w2_ref[...], preferred_element_type=jnp.float32) + b2_ref[...]
    h = jnp.maximum(h, 0.0).astype(wdt)

    # ----- fused (encoder L3 + decoder L1, no ReLU in between) -----
    h = jnp.dot(h, w34_ref[...], preferred_element_type=jnp.float32) + b34_ref[...]
    h = jnp.maximum(h, 0.0).astype(wdt)

    # ----- decoder -----
    h = jnp.dot(h, w5_ref[...], preferred_element_type=jnp.float32) + b5_ref[...]
    h = jnp.maximum(h, 0.0).astype(wdt)
    y = jnp.dot(h, w6_ref[...], preferred_element_type=jnp.float32) + b6_ref[...]

    out_ref[...] = y.astype(out_ref.dtype)


def prepare_params(params, *, use_bf16=True):
    """One-time parameter preparation (hoisted off the per-call hot path):
      * algebraic fusion of the no-ReLU pair: z = h@w3+b3 ; d = z@w4+b4  ==>  d = h@W34 + b34
      * weight dtype cast (bf16 by default for the MXU fast path); biases stay f32
        because they are added to the f32 accumulator."""
    (w1, b1, w2, b2, w3, b3, w4, b4, w5, b5, w6, b6) = params
    w34 = jnp.dot(w3, w4, preferred_element_type=jnp.float32)       # (64, 64)
    b34 = jnp.dot(b3, w4, preferred_element_type=jnp.float32) + b4  # (1, 64)

    w_dtype = jnp.bfloat16 if use_bf16 else jnp.float32
    cast_w = lambda w: w.astype(w_dtype)
    cast_b = lambda b: b.astype(jnp.float32)
    return (cast_w(w1), cast_b(b1), cast_w(w2), cast_b(b2),
            cast_w(w34), cast_b(b34),
            cast_w(w5), cast_b(b5), cast_w(w6), cast_b(b6))


@functools.partial(jax.jit, static_argnames=("tb",))
def anomaly_detector_forward(x, prepared, *, tb=TB_TARGET):
    """x: (B, SEQ_LEN, INPUT_DIM) -> (B, SEQ_LEN, INPUT_DIM) float32."""
    B = x.shape[0]
    x_flat = x.reshape(B, FLAT).astype(jnp.float32)  # nn.Flatten

    # Balanced batch tiling:
    #   * tiles are ~equal size, multiples of 8 rows (f32 sublane tiling)
    #   * padding waste is < 8 rows per tile (instead of up to a full tile)
    #   * with >1 step, use an even step count so v7x megacore shards evenly across 2 TCs.
    num_tiles = pl.cdiv(B, tb)
    if num_tiles > 1 and num_tiles % 2 == 1:
        num_tiles += 1
    tb_eff = _round_up(pl.cdiv(B, num_tiles), 8)
    b_pad = num_tiles * tb_eff
    if b_pad != B:
        x_flat = jnp.pad(x_flat, ((0, b_pad - B), (0, 0)))
    grid = (num_tiles,)

    def tile_spec():
        return pl.BlockSpec((tb_eff, FLAT), lambda i: (i, 0))

    def resident_spec(shape):
        # Full-array block, constant index_map: DMA'd once, resident in VMEM across tiles.
        return pl.BlockSpec(shape, lambda i: (0, 0))

    out_flat = pl.pallas_call(
        _ae_kernel,
        out_shape=jax.ShapeDtypeStruct((b_pad, FLAT), jnp.float32),
        grid_spec=pltpu.PrefetchScalarGridSpec(
            num_scalar_prefetch=0,
            grid=grid,
            in_specs=[tile_spec()] + [resident_spec(w.shape) for w in prepared],
            out_specs=tile_spec(),
        ),
        compiler_params=pltpu.CompilerParams(
            dimension_semantics=("parallel",),  # v7x megacore shards the batch axis
        ),
    )(x_flat, *prepared)

    # Drop pad rows, nn.Unflatten(1, (seq_len, input_dim))
    return out_flat[:B].reshape(B, SEQ_LEN, INPUT_DIM)


def init_params(key):
    """Deterministic init mirroring nn.Linear default (uniform +-1/sqrt(fan_in)).
    Weights stored transposed: (in_features, out_features); biases (1, out_features)."""
    dims = [(FLAT, H1), (H1, H2), (H2, Z), (Z, H2), (H2, H1), (H1, FLAT)]
    params = []
    for (fan_in, fan_out) in dims:
        key, kw, kb = jax.random.split(key, 3)
        bound = 1.0 / (fan_in ** 0.5)
        w = jax.random.uniform(kw, (fan_in, fan_out), jnp.float32, -bound, bound)
        b = jax.random.uniform(kb, (1, fan_out), jnp.float32, -bound, bound)
        params.extend([w, b])
    return tuple(params)


def reference_forward(x, params):
    (w1, b1, w2, b2, w3, b3, w4, b4, w5, b5, w6, b6) = params
    h = x.reshape(x.shape[0], FLAT)
    h = jnp.maximum(h @ w1 + b1, 0.0)
    h = jnp.maximum(h @ w2 + b2, 0.0)
    z = h @ w3 + b3
    h = jnp.maximum(z @ w4 + b4, 0.0)
    h = jnp.maximum(h @ w5 + b5, 0.0)
    y = h @ w6 + b6
    return y.reshape(x.shape[0], SEQ_LEN, INPUT_DIM)


if __name__ == "__main__":
    key = jax.random.PRNGKey(0)
    key, kx, kx_big = jax.random.split(key, 3)
    params = init_params(key)

    prepared_f32 = prepare_params(params, use_bf16=False)   # verification path
    prepared_bf16 = prepare_params(params, use_bf16=True)   # production path

    # Small shape consistent with the module (B=2, seq_len=10, input_dim=4).
    B = 2
    x = jax.random.normal(kx, (B, SEQ_LEN, INPUT_DIM), jnp.float32)
    ref = reference_forward(x, params)

    out = jax.block_until_ready(anomaly_detector_forward(x, prepared_f32))
    assert out.shape == (B, SEQ_LEN, INPUT_DIM), out.shape
    assert jnp.allclose(out, ref, atol=1e-4, rtol=1e-4), "f32 mismatch vs reference (B=2)"

    out_bf16 = jax.block_until_ready(anomaly_detector_forward(x, prepared_bf16))
    assert jnp.allclose(out_bf16, ref, atol=5e-2, rtol=5e-2), "bf16 mismatch vs reference (B=2)"

    # Exercise the batch-tiled pipeline: multiple grid steps + ragged last tile.
    B_big = 2000
    x_big = jax.random.normal(kx_big, (B_big, SEQ_LEN, INPUT_DIM), jnp.float32)
    ref_big = reference_forward(x_big, params)

    out_big = jax.block_until_ready(anomaly_detector_forward(x_big, prepared_f32, tb=512))
    assert out_big.shape == (B_big, SEQ_LEN, INPUT_DIM), out_big.shape
    assert jnp.allclose(out_big, ref_big, atol=1e-4, rtol=1e-4), "f32 mismatch vs reference (B=2000)"

    out_big_bf16 = jax.block_until_ready(anomaly_detector_forward(x_big, prepared_bf16, tb=512))
    assert jnp.allclose(out_big_bf16, ref_big, atol=5e-2, rtol=5e-2), "bf16 mismatch vs reference (B=2000)"

    print("KERNEL_OK")
</pallas_src>

<mosaic_0001>
module attributes {stable_mosaic.version = 11 : i64} {
  func.func @_ae_kernel(%arg0: i32, %arg1: memref<8x40xf32, #tpu.memory_space<vmem>>, %arg2: memref<40x128xf32, #tpu.memory_space<vmem>>, %arg3: memref<1x128xf32, #tpu.memory_space<vmem>>, %arg4: memref<128x64xf32, #tpu.memory_space<vmem>>, %arg5: memref<1x64xf32, #tpu.memory_space<vmem>>, %arg6: memref<64x64xf32, #tpu.memory_space<vmem>>, %arg7: memref<1x64xf32, #tpu.memory_space<vmem>>, %arg8: memref<64x128xf32, #tpu.memory_space<vmem>>, %arg9: memref<1x128xf32, #tpu.memory_space<vmem>>, %arg10: memref<128x40xf32, #tpu.memory_space<vmem>>, %arg11: memref<1x40xf32, #tpu.memory_space<vmem>>, %arg12: memref<8x40xf32, #tpu.memory_space<vmem>>) attributes {dimension_semantics = [#tpu.dimension_semantics<parallel>], iteration_bounds = array<i64: 1>, scalar_prefetch = 0 : i64, scratch_operands = 0 : i64, tpu.core_type = #tpu.core_type<tc>, window_params = [{transform_indices = @transform_0, window_bounds = array<i64: 8, 40>}, {pipeline_mode = #tpu.pipeline_mode<synchronous>, transform_indices = @transform_1, window_bounds = array<i64: 40, 128>}, {pipeline_mode = #tpu.pipeline_mode<synchronous>, transform_indices = @transform_2, window_bounds = array<i64: 1, 128>}, {pipeline_mode = #tpu.pipeline_mode<synchronous>, transform_indices = @transform_3, window_bounds = array<i64: 128, 64>}, {pipeline_mode = #tpu.pipeline_mode<synchronous>, transform_indices = @transform_4, window_bounds = array<i64: 1, 64>}, {pipeline_mode = #tpu.pipeline_mode<synchronous>, transform_indices = @transform_5, window_bounds = array<i64: 64, 64>}, {pipeline_mode = #tpu.pipeline_mode<synchronous>, transform_indices = @transform_6, window_bounds = array<i64: 1, 64>}, {pipeline_mode = #tpu.pipeline_mode<synchronous>, transform_indices = @transform_7, window_bounds = array<i64: 64, 128>}, {pipeline_mode = #tpu.pipeline_mode<synchronous>, transform_indices = @transform_8, window_bounds = array<i64: 1, 128>}, {pipeline_mode = #tpu.pipeline_mode<synchronous>, transform_indices = @transform_9, window_bounds = array<i64: 128, 40>}, {pipeline_mode = #tpu.pipeline_mode<synchronous>, transform_indices = @transform_10, window_bounds = array<i64: 1, 40>}, {transform_indices = @transform_11, window_bounds = array<i64: 8, 40>}]} {
    %c0 = arith.constant 0 : index
    %c0_0 = arith.constant 0 : index
    %0 = vector.load %arg1[%c0, %c0_0] : memref<8x40xf32, #tpu.memory_space<vmem>>, vector<8x40xf32>
    %c0_1 = arith.constant 0 : index
    %c0_2 = arith.constant 0 : index
    %1 = vector.load %arg2[%c0_1, %c0_2] : memref<40x128xf32, #tpu.memory_space<vmem>>, vector<40x128xf32>
    %cst = arith.constant dense<0.000000e+00> : vector<8x128xf32>
    %2 = tpu.matmul %0, %1, %cst {dimension_numbers = #tpu.dot_dimension_numbers<[1], [0], [0], [1], [0, 0, 1, 1], [], []>} : vector<8x40xf32>, vector<40x128xf32>, vector<8x128xf32> -> vector<8x128xf32>
    %c0_3 = arith.constant 0 : index
    %c0_4 = arith.constant 0 : index
    %3 = vector.load %arg3[%c0_3, %c0_4] : memref<1x128xf32, #tpu.memory_space<vmem>>, vector<1x128xf32>
    %4 = vector.broadcast %3 : vector<1x128xf32> to vector<8x128xf32>
    %5 = arith.addf %2, %4 : vector<8x128xf32>
    %cst_5 = arith.constant 0.000000e+00 : f32
    %6 = vector.broadcast %cst_5 : f32 to vector<8x128xf32>
    %7 = arith.maximumf %5, %6 : vector<8x128xf32>
    %c0_6 = arith.constant 0 : index
    %c0_7 = arith.constant 0 : index
    %8 = vector.load %arg4[%c0_6, %c0_7] : memref<128x64xf32, #tpu.memory_space<vmem>>, vector<128x64xf32>
    %cst_8 = arith.constant dense<0.000000e+00> : vector<8x64xf32>
    %9 = tpu.matmul %7, %8, %cst_8 {dimension_numbers = #tpu.dot_dimension_numbers<[1], [0], [0], [1], [0, 0, 1, 1], [], []>} : vector<8x128xf32>, vector<128x64xf32>, vector<8x64xf32> -> vector<8x64xf32>
    %c0_9 = arith.constant 0 : index
    %c0_10 = arith.constant 0 : index
    %10 = vector.load %arg5[%c0_9, %c0_10] : memref<1x64xf32, #tpu.memory_space<vmem>>, vector<1x64xf32>
    %11 = vector.broadcast %10 : vector<1x64xf32> to vector<8x64xf32>
    %12 = arith.addf %9, %11 : vector<8x64xf32>
    %cst_11 = arith.constant 0.000000e+00 : f32
    %13 = vector.broadcast %cst_11 : f32 to vector<8x64xf32>
    %14 = arith.maximumf %12, %13 : vector<8x64xf32>
    %c0_12 = arith.constant 0 : index
    %c0_13 = arith.constant 0 : index
    %15 = vector.load %arg6[%c0_12, %c0_13] : memref<64x64xf32, #tpu.memory_space<vmem>>, vector<64x64xf32>
    %cst_14 = arith.constant dense<0.000000e+00> : vector<8x64xf32>
    %16 = tpu.matmul %14, %15, %cst_14 {dimension_numbers = #tpu.dot_dimension_numbers<[1], [0], [0], [1], [0, 0, 1, 1], [], []>} : vector<8x64xf32>, vector<64x64xf32>, vector<8x64xf32> -> vector<8x64xf32>
    %c0_15 = arith.constant 0 : index
    %c0_16 = arith.constant 0 : index
    %17 = vector.load %arg7[%c0_15, %c0_16] : memref<1x64xf32, #tpu.memory_space<vmem>>, vector<1x64xf32>
    %18 = vector.broadcast %17 : vector<1x64xf32> to vector<8x64xf32>
    %19 = arith.addf %16, %18 : vector<8x64xf32>
    %cst_17 = arith.constant 0.000000e+00 : f32
    %20 = vector.broadcast %cst_17 : f32 to vector<8x64xf32>
    %21 = arith.maximumf %19, %20 : vector<8x64xf32>
    %c0_18 = arith.constant 0 : index
    %c0_19 = arith.constant 0 : index
    %22 = vector.load %arg8[%c0_18, %c0_19] : memref<64x128xf32, #tpu.memory_space<vmem>>, vector<64x128xf32>
    %cst_20 = arith.constant dense<0.000000e+00> : vector<8x128xf32>
    %23 = tpu.matmul %21, %22, %cst_20 {dimension_numbers = #tpu.dot_dimension_numbers<[1], [0], [0], [1], [0, 0, 1, 1], [], []>} : vector<8x64xf32>, vector<64x128xf32>, vector<8x128xf32> -> vector<8x128xf32>
    %c0_21 = arith.constant 0 : index
    %c0_22 = arith.constant 0 : index
    %24 = vector.load %arg9[%c0_21, %c0_22] : memref<1x128xf32, #tpu.memory_space<vmem>>, vector<1x128xf32>
    %25 = vector.broadcast %24 : vector<1x128xf32> to vector<8x128xf32>
    %26 = arith.addf %23, %25 : vector<8x128xf32>
    %cst_23 = arith.constant 0.000000e+00 : f32
    %27 = vector.broadcast %cst_23 : f32 to vector<8x128xf32>
    %28 = arith.maximumf %26, %27 : vector<8x128xf32>
    %c0_24 = arith.constant 0 : index
    %c0_25 = arith.constant 0 : index
    %29 = vector.load %arg10[%c0_24, %c0_25] : memref<128x40xf32, #tpu.memory_space<vmem>>, vector<128x40xf32>
    %cst_26 = arith.constant dense<0.000000e+00> : vector<8x40xf32>
    %30 = tpu.matmul %28, %29, %cst_26 {dimension_numbers = #tpu.dot_dimension_numbers<[1], [0], [0], [1], [0, 0, 1, 1], [], []>} : vector<8x128xf32>, vector<128x40xf32>, vector<8x40xf32> -> vector<8x40xf32>
    %c0_27 = arith.constant 0 : index
    %c0_28 = arith.constant 0 : index
    %31 = vector.load %arg11[%c0_27, %c0_28] : memref<1x40xf32, #tpu.memory_space<vmem>>, vector<1x40xf32>
    %32 = vector.broadcast %31 : vector<1x40xf32> to vector<8x40xf32>
    %33 = arith.addf %30, %32 : vector<8x40xf32>
    %c0_29 = arith.constant 0 : index
    %c0_30 = arith.constant 0 : index
    %34 = vector.load %arg12[%c0_29, %c0_30] : memref<8x40xf32, #tpu.memory_space<vmem>>, vector<8x40xf32>
    tpu.vector_store %arg12[%c0_29, %c0_30], %33 {strides = array<i32>} : memref<8x40xf32, #tpu.memory_space<vmem>>, vector<8x40xf32>,
    return
  }
  func.func @transform_0(%arg0: i32) -> (i32, i32) {
    %c0_i32 = arith.constant 0 : i32
    %c0_i32_0 = arith.constant 0 : i32
    return %arg0, %c0_i32 : i32, i32
  }
  func.func @transform_1(%arg0: i32) -> (i32, i32) {
    %c0_i32 = arith.constant 0 : i32
    %c0_i32_0 = arith.constant 0 : i32
    %c0_i32_1 = arith.constant 0 : i32
    return %c0_i32, %c0_i32_0 : i32, i32
  }
  func.func @transform_2(%arg0: i32) -> (i32, i32) {
    %c0_i32 = arith.constant 0 : i32
    %c0_i32_0 = arith.constant 0 : i32
    %c0_i32_1 = arith.constant 0 : i32
    return %c0_i32, %c0_i32_0 : i32, i32
  }
  func.func @transform_3(%arg0: i32) -> (i32, i32) {
    %c0_i32 = arith.constant 0 : i32
    %c0_i32_0 = arith.constant 0 : i32
    %c0_i32_1 = arith.constant 0 : i32
    return %c0_i32, %c0_i32_0 : i32, i32
  }
  func.func @transform_4(%arg0: i32) -> (i32, i32) {
    %c0_i32 = arith.constant 0 : i32
    %c0_i32_0 = arith.constant 0 : i32
    %c0_i32_1 = arith.constant 0 : i32
    return %c0_i32, %c0_i32_0 : i32, i32
  }
  func.func @transform_5(%arg0: i32) -> (i32, i32) {
    %c0_i32 = arith.constant 0 : i32
    %c0_i32_0 = arith.constant 0 : i32
    %c0_i32_1 = arith.constant 0 : i32
    return %c0_i32, %c0_i32_0 : i32, i32
  }
  func.func @transform_6(%arg0: i32) -> (i32, i32) {
    %c0_i32 = arith.constant 0 : i32
    %c0_i32_0 = arith.constant 0 : i32
    %c0_i32_1 = arith.constant 0 : i32
    return %c0_i32, %c0_i32_0 : i32, i32
  }
  func.func @transform_7(%arg0: i32) -> (i32, i32) {
    %c0_i32 = arith.constant 0 : i32
    %c0_i32_0 = arith.constant 0 : i32
    %c0_i32_1 = arith.constant 0 : i32
    return %c0_i32, %c0_i32_0 : i32, i32
  }
  func.func @transform_8(%arg0: i32) -> (i32, i32) {
    %c0_i32 = arith.constant 0 : i32
    %c0_i32_0 = arith.constant 0 : i32
    %c0_i32_1 = arith.constant 0 : i32
    return %c0_i32, %c0_i32_0 : i32, i32
  }
  func.func @transform_9(%arg0: i32) -> (i32, i32) {
    %c0_i32 = arith.constant 0 : i32
    %c0_i32_0 = arith.constant 0 : i32
    %c0_i32_1 = arith.constant 0 : i32
    return %c0_i32, %c0_i32_0 : i32, i32
  }
  func.func @transform_10(%arg0: i32) -> (i32, i32) {
    %c0_i32 = arith.constant 0 : i32
    %c0_i32_0 = arith.constant 0 : i32
    %c0_i32_1 = arith.constant 0 : i32
    return %c0_i32, %c0_i32_0 : i32, i32
  }
  func.func @transform_11(%arg0: i32) -> (i32, i32) {
    %c0_i32 = arith.constant 0 : i32
    %c0_i32_0 = arith.constant 0 : i32
    return %arg0, %c0_i32 : i32, i32
  }
}

</mosaic_0001>

<bundles_post_ra>
// kernel: anomaly_detector_forward.1
= control target key start
LH: loop header
LB: loop body
LE: loop exit
PB: predicated region body
PF: predicated region fallthrough
CT: control target
= control target key end

     0   :  { %v686_v0 = vmov 0.0   ;;  %vm687_vm0 = vmmov 0   ;;  %vm51_vm1 = vcmask 326656   ;;  %vm235_vm2 = vcmask 523264   ;;  %s995_s1 = inlined_call_operand.vmem [shape: f32[40,128], index: 1, kind: input, shape index: {}]   ;;  %s996_s3 = inlined_call_operand.vmem [shape: f32[128,64], index: 3, kind: input, shape index: {}]   ;;  %s997_s0 = inlined_call_operand.vmem [shape: f32[8,40], index: 0, kind: input, shape index: {}]   ;;  %s998_s5 = inlined_call_operand.vmem [shape: f32[64,64], index: 5, kind: input, shape index: {}]   ;;  %s999_s2 = inlined_call_operand.vmem [shape: f32[1,128], index: 2, kind: input, shape index: {}]   ;;  %s1000_s4 = inlined_call_operand.vmem [shape: f32[1,64], index: 4, kind: input, shape index: {}]   ;;  %s1001_s7 = inlined_call_operand.vmem [shape: f32[64,128], index: 7, kind: input, shape index: {}]   ;;  %s1002_s9 = inlined_call_operand.vmem [shape: f32[128,40], index: 9, kind: input, shape index: {}]   ;;  %s1003_s6 = inlined_call_operand.vmem [shape: f32[1,64], index: 6, kind: input, shape index: {}]   ;;  %s1004_s8 = inlined_call_operand.vmem [shape: f32[1,128], index: 8, kind: input, shape index: {}]   ;;  %s1005_s10 = inlined_call_operand.vmem [shape: f32[1,40], index: 10, kind: input, shape index: {}]   ;;  %s1006_s11 = inlined_call_operand.vmem [shape: f32[8,40], index: 11, kind: output, shape index: {}]  }
   0x1   :  { %563 = vmatprep.subr.mxu0 %v686_v0  ;;  %v43_v1 = vld [vmem:[%s995_s1 + $0x20] sm:$0xff]  ;;  %v42_v2 = vld [vmem:[%s995_s1 + $0x18] sm:$0xff]  ;;  %573 = vmatprep.mubr.msk.f32.mxu0 %vm687_vm0, %v686_v0  ;;  %v41_v3 = vld [vmem:[%s995_s1 + $0x10] sm:$0xff] }
   0x2   :  { %564 = vmatpush3.msra.mxu0 %v43_v1  ;;  %576 = vmatprep.subr.mxu1 %v686_v0  ;;  %v141_v4 = vld [vmem:[%s996_s3 + $0x78] sm:$0xff]  ;;  %v140_v5 = vld [vmem:[%s996_s3 + $0x70] sm:$0xff]  ;;  %v40_v6 = vld [vmem:[%s995_s1 + $0x8] sm:$0xff] }
   0x3   :  { %565 = vmatprep.subr.mxu0 %v686_v0  ;;  %608 = vmatprep.mubr.msk.f32.mxu1 %vm687_vm0, %v686_v0  ;;  %v139_v7 = vld [vmem:[%s996_s3 + $0x68] sm:$0xff]  ;;  %v39_v8 = vld [vmem:[%s995_s1] sm:$0xff]  ;;  %v137_v11 = vld [vmem:[%s996_s3 + $0x58] sm:$0xff] }
   0x4   :  { %566 = vmatpush3.msra.mxu0 %v42_v2  ;;  %577 = vmatpush3.msra.mxu1 %v141_v4  ;;  %v138_v9 = vld [vmem:[%s996_s3 + $0x60] sm:$0xff]  ;;  %v136_v12 = vld [vmem:[%s996_s3 + $0x50] sm:$0xff]  ;;  %v135_v13 = vld [vmem:[%s996_s3 + $0x48] sm:$0xff] }
   0x5   :  { %567 = vmatprep.subr.mxu0 %v686_v0  ;;  %578 = vmatprep.subr.mxu1 %v686_v0  ;;  %v38_v10 = vld [vmem:[%s997_s0] sm:$0xff]  ;;  %v133_v15 = vld [vmem:[%s996_s3 + $0x38] sm:$0xff]  ;;  %v132_v16 = vld [vmem:[%s996_s3 + $0x30] sm:$0xff] }
   0x6   :  { %568 = vmatpush3.msra.mxu0 %v41_v3  ;;  %579 = vmatpush3.msra.mxu1 %v140_v5  ;;  %v134_v14 = vld [vmem:[%s996_s3 + $0x40] sm:$0xff]  ;;  %v131_v17 = vld [vmem:[%s996_s3 + $0x28] sm:$0xff]  ;;  %v129_v19 = vld [vmem:[%s996_s3 + $0x18] sm:$0xff] }
   0x7   :  { %569 = vmatprep.subr.mxu0 %v686_v0  ;;  %580 = vmatprep.subr.mxu1 %v686_v0  ;;  %v130_v18 = vld [vmem:[%s996_s3 + $0x20] sm:$0xff]  ;;  %v128_v20 = vld [vmem:[%s996_s3 + $0x10] sm:$0xff]  ;;  %v127_v21 = vld [vmem:[%s996_s3 + $0x8] sm:$0xff] }
   0x8   :  { %570 = vmatpush3.msra.mxu0 %v40_v6  ;;  %581 = vmatpush3.msra.mxu1 %v139_v7  ;;  %v126_v22 = vld [vmem:[%s996_s3] sm:$0xff]  ;;  %v227_v23 = vld [vmem:[%s998_s5 + $0x38] sm:$0xff]  ;;  %v226_v24 = vld [vmem:[%s998_s5 + $0x30] sm:$0xff] }
   0x9   :  { %571 = vmatprep.subr.mxu0 %v686_v0  ;;  %582 = vmatprep.subr.mxu1 %v686_v0  ;;  %v225_v25 = vld [vmem:[%s998_s5 + $0x28] sm:$0xff]  ;;  %v224_v26 = vld [vmem:[%s998_s5 + $0x20] sm:$0xff]  ;;  %v223_v27 = vld [vmem:[%s998_s5 + $0x18] sm:$0xff] }
   0xa   :  { %572 = vmatpush3.msra.mxu0 %v39_v8  ;;  %583 = vmatpush3.msra.mxu1 %v138_v9  ;;  %v497_v28 = vld [vmem:[%s999_s2] ss:$0 sm:$0xff]  ;;  %v222_v33 = vld [vmem:[%s998_s5 + $0x10] sm:$0xff]  ;;  %v221_v34 = vld [vmem:[%s998_s5 + $0x8] sm:$0xff] }
   0xb   :  { %574 = vmatmul.mubr.msk.f32.vlgmr.msra.gmra.mxu0 %vm51_vm1, %v38_v10  ;;  %584 = vmatprep.subr.mxu1 %v686_v0  ;;  %v220_v35 = vld [vmem:[%s998_s5] sm:$0xff]  ;;  %v317_v41 = vld [vmem:[%s1001_s7 + $0x38] sm:$0xff]  ;;  %v316_v42 = vld [vmem:[%s1001_s7 + $0x30] sm:$0xff] }
   0xc   :  { %585 = vmatpush3.msra.mxu1 %v137_v11  ;;  %611 = vmatprep.subr.mxu0 %v686_v0  ;;  %v499_v36 = vld [vmem:[%s1000_s4] ss:$0 sm:$0xff]  ;;  %v315_v43 = vld [vmem:[%s1001_s7 + $0x28] sm:$0xff]  ;;  %v313_v45 = vld [vmem:[%s1001_s7 + $0x18] sm:$0xff] }
   0xd   :  { %586 = vmatprep.subr.mxu1 %v686_v0  ;;  %627 = vmatprep.mubr.msk.f32.mxu0 %vm687_vm0, %v686_v0  ;;  %v314_v44 = vld [vmem:[%s1001_s7 + $0x20] sm:$0xff]  ;;  %v312_v46 = vld [vmem:[%s1001_s7 + $0x10] sm:$0xff]  ;;  %v311_v47 = vld [vmem:[%s1001_s7 + $0x8] sm:$0xff] }
   0xe   :  { %587 = vmatpush3.msra.mxu1 %v136_v12  ;;  %612 = vmatpush3.msra.mxu0 %v227_v23  ;;  %v310_v48 = vld [vmem:[%s1001_s7] sm:$0xff]  ;;  %v414_v49 = vld [vmem:[%s1002_s9 + $0x78] sm:$0xff]  ;;  %v413_v50 = vld [vmem:[%s1002_s9 + $0x70] sm:$0xff] }
   0xf   :  { %588 = vmatprep.subr.mxu1 %v686_v0  ;;  %613 = vmatprep.subr.mxu0 %v686_v0  ;;  %v412_v51 = vld [vmem:[%s1002_s9 + $0x68] sm:$0xff]  ;;  %v411_v52 = vld [vmem:[%s1002_s9 + $0x60] sm:$0xff]  ;;  %v410_v53 = vld [vmem:[%s1002_s9 + $0x58] sm:$0xff] }
  0x10   :  { %589 = vmatpush3.msra.mxu1 %v135_v13  ;;  %614 = vmatpush3.msra.mxu0 %v226_v24  ;;  %v409_v54 = vld [vmem:[%s1002_s9 + $0x50] sm:$0xff]  ;;  %v408_v55 = vld [vmem:[%s1002_s9 + $0x48] sm:$0xff]  ;;  %v407_v56 = vld [vmem:[%s1002_s9 + $0x40] sm:$0xff] }
  0x11   :  { %590 = vmatprep.subr.mxu1 %v686_v0  ;;  %615 = vmatprep.subr.mxu0 %v686_v0  ;;  %v406_v57 = vld [vmem:[%s1002_s9 + $0x38] sm:$0xff]  ;;  %v405_v58 = vld [vmem:[%s1002_s9 + $0x30] sm:$0xff]  ;;  %v404_v59 = vld [vmem:[%s1002_s9 + $0x28] sm:$0xff] }
  0x12   :  { %591 = vmatpush3.msra.mxu1 %v134_v14  ;;  %616 = vmatpush3.msra.mxu0 %v225_v25  ;;  %v403_v60 = vld [vmem:[%s1002_s9 + $0x20] sm:$0xff]  ;;  %v402_v61 = vld [vmem:[%s1002_s9 + $0x18] sm:$0xff]  ;;  %v401_v4 = vld [vmem:[%s1002_s9 + $0x10] sm:$0xff] }
  0x13   :  { %592 = vmatprep.subr.mxu1 %v686_v0  ;;  %617 = vmatprep.subr.mxu0 %v686_v0  ;;  %v500_v62 = vld [vmem:[%s1003_s6] ss:$0 sm:$0xff]  ;;  %v400_v5 = vld [vmem:[%s1002_s9 + $0x8] sm:$0xff] }
  0x14   :  { %593 = vmatpush3.msra.mxu1 %v133_v15  ;;  %618 = vmatpush3.msra.mxu0 %v224_v26  ;;  %v399_v6 = vld [vmem:[%s1002_s9] sm:$0xff] }
  0x15   :  { %594 = vmatprep.subr.mxu1 %v686_v0  ;;  %619 = vmatprep.subr.mxu0 %v686_v0  ;;  %v502_v7 = vld [vmem:[%s1004_s8] ss:$0 sm:$0xff] }
  0x16   :  { %595 = vmatpush3.msra.mxu1 %v132_v16  ;;  %620 = vmatpush3.msra.mxu0 %v223_v27  ;;  %v504_v12 = vld [vmem:[%s1005_s10] ss:$0 sm:$0xff] }
  0x17   :  { %596 = vmatprep.subr.mxu1 %v686_v0  ;;  %621 = vmatprep.subr.mxu0 %v686_v0 }
  0x18   :  { %597 = vmatpush3.msra.mxu1 %v131_v17  ;;  %622 = vmatpush3.msra.mxu0 %v222_v33 }
  0x19   :  { %598 = vmatprep.subr.mxu1 %v686_v0  ;;  %623 = vmatprep.subr.mxu0 %v686_v0 }
  0x1a   :  { %599 = vmatpush3.msra.mxu1 %v130_v18  ;;  %624 = vmatpush3.msra.mxu0 %v221_v34 }
  0x1b   :  { %600 = vmatprep.subr.mxu1 %v686_v0  ;;  %625 = vmatprep.subr.mxu0 %v686_v0 }
  0x1c   :  { %601 = vmatpush3.msra.mxu1 %v129_v19  ;;  %626 = vmatpush3.msra.mxu0 %v220_v35 }
  0x1d   :  { %602 = vmatprep.subr.mxu1 %v686_v0  ;;  %630 = vmatprep.subr.mxu0 %v686_v0 }
  0x1e   :  { %603 = vmatpush3.msra.mxu1 %v128_v20 }
  0x1f   :  { %604 = vmatprep.subr.mxu1 %v686_v0 }
  0x20   :  { %605 = vmatpush3.msra.mxu1 %v127_v21 }
  0x21   :  { %606 = vmatprep.subr.mxu1 %v686_v0 }
  0x22   :  { %607 = vmatpush3.msra.mxu1 %v126_v22 }
  0x23   :  { %649 = vmatprep.subr.mxu1 %v686_v0 }
  0xcb   :  { %v121_v29 = vpop.f32.mrf.mxu0 }
  0xcc   :  { %v122_v30 = vadd.f32 %v497_v28, %v121_v29 }
  0xcd   :  { %v575_v31 = vpop.f32.mrf.mxu0 }
  0xce   :  { %v125_v32 = vmax.f32 %v122_v30, 0.0 }
  0xd0   :  { %609 = vmatmul.mubr.f32.vlgmr.msra.gmra.mxu1 %v125_v32 }
  0xd1   :  { %681 = vmatprep.mubr.msk.f32.mxu1 %vm687_vm0, %v686_v0  ;;  %650 = vmatpush3.msra.mxu1 %v414_v49 }
  0xd2   :  { %651 = vmatprep.subr.mxu1 %v686_v0 }
  0xd3   :  { %652 = vmatpush3.msra.mxu1 %v413_v50 }
  0xd4   :  { %653 = vmatprep.subr.mxu1 %v686_v0 }
  0xd5   :  { %654 = vmatpush3.msra.mxu1 %v412_v51 }
  0xd6   :  { %655 = vmatprep.subr.mxu1 %v686_v0 }
  0xd7   :  { %656 = vmatpush3.msra.mxu1 %v411_v52 }
  0xd8   :  { %657 = vmatprep.subr.mxu1 %v686_v0 }
  0xd9   :  { %658 = vmatpush3.msra.mxu1 %v410_v53 }
  0xda   :  { %659 = vmatprep.subr.mxu1 %v686_v0 }
  0xdb   :  { %660 = vmatpush3.msra.mxu1 %v409_v54 }
  0xdc   :  { %661 = vmatprep.subr.mxu1 %v686_v0 }
  0xdd   :  { %662 = vmatpush3.msra.mxu1 %v408_v55 }
  0xde   :  { %663 = vmatprep.subr.mxu1 %v686_v0 }
  0xdf   :  { %664 = vmatpush3.msra.mxu1 %v407_v56 }
  0xe0   :  { %665 = vmatprep.subr.mxu1 %v686_v0 }
  0xe1   :  { %666 = vmatpush3.msra.mxu1 %v406_v57 }
  0xe2   :  { %667 = vmatprep.subr.mxu1 %v686_v0 }
  0xe3   :  { %668 = vmatpush3.msra.mxu1 %v405_v58 }
  0xe4   :  { %669 = vmatprep.subr.mxu1 %v686_v0 }
  0xe5   :  { %670 = vmatpush3.msra.mxu1 %v404_v59 }
  0xe6   :  { %671 = vmatprep.subr.mxu1 %v686_v0 }
  0xe7   :  { %672 = vmatpush3.msra.mxu1 %v403_v60 }
  0xe8   :  { %673 = vmatprep.subr.mxu1 %v686_v0 }
  0xe9   :  { %674 = vmatpush3.msra.mxu1 %v402_v61 }
  0xea   :  { %675 = vmatprep.subr.mxu1 %v686_v0 }
  0xeb   :  { %676 = vmatpush3.msra.mxu1 %v401_v4 }
  0xec   :  { %677 = vmatprep.subr.mxu1 %v686_v0 }
  0xed   :  { %678 = vmatpush3.msra.mxu1 %v400_v5 }
  0xee   :  { %679 = vmatprep.subr.mxu1 %v686_v0 }
  0xef   :  { %680 = vmatpush3.msra.mxu1 %v399_v6 }
 0x190   :  { %v215_v37 = vpop.f32.mrf.mxu1 }
 0x191   :  { %v216_v38 = vadd.f32 %v499_v36, %v215_v37 }
 0x192   :  { %v610_v39 = vpop.f32.mrf.mxu1 }
 0x193   :  { %v219_v40 = vmax.f32 %v216_v38, 0.0 }
 0x195   :  { %628 = vmatmul.mubr.msk.f32.vlgmr.msra.gmra.mxu0 %vm235_vm2, %v219_v40 }
 0x196   :  { %631 = vmatpush3.msra.mxu0 %v317_v41  ;;  %646 = vmatprep.mubr.msk.f32.mxu0 %vm687_vm0, %v686_v0 }
 0x197   :  { %632 = vmatprep.subr.mxu0 %v686_v0 }
 0x198   :  { %633 = vmatpush3.msra.mxu0 %v316_v42 }
 0x199   :  { %634 = vmatprep.subr.mxu0 %v686_v0 }
 0x19a   :  { %635 = vmatpush3.msra.mxu0 %v315_v43 }
 0x19b   :  { %636 = vmatprep.subr.mxu0 %v686_v0 }
 0x19c   :  { %637 = vmatpush3.msra.mxu0 %v314_v44 }
 0x19d   :  { %638 = vmatprep.subr.mxu0 %v686_v0 }
 0x19e   :  { %639 = vmatpush3.msra.mxu0 %v313_v45 }
 0x19f   :  { %640 = vmatprep.subr.mxu0 %v686_v0 }
 0x1a0   :  { %641 = vmatpush3.msra.mxu0 %v312_v46 }
 0x1a1   :  { %642 = vmatprep.subr.mxu0 %v686_v0 }
 0x1a2   :  { %643 = vmatpush3.msra.mxu0 %v311_v47 }
 0x1a3   :  { %644 = vmatprep.subr.mxu0 %v686_v0 }
 0x1a4   :  { %645 = vmatpush3.msra.mxu0 %v310_v48 }
 0x255   :  { %v305_v63 = vpop.f32.mrf.mxu0 }
 0x256   :  { %v306_v1 = vadd.f32 %v500_v62, %v305_v63 }
 0x257   :  { %v629_v2 = vpop.f32.mrf.mxu0 }
 0x258   :  { %v309_v3 = vmax.f32 %v306_v1, 0.0 }
 0x25a   :  { %647 = vmatmul.mubr.msk.f32.vlgmr.msra.gmra.mxu0 %vm235_vm2, %v309_v3 }
 0x31a   :  { %v394_v8 = vpop.f32.mrf.mxu0 }
 0x31b   :  { %v395_v9 = vadd.f32 %v502_v7, %v394_v8 }
 0x31c   :  { %v648_v10 = vpop.f32.mrf.mxu0 }
 0x31d   :  { %v398_v11 = vmax.f32 %v395_v9, 0.0 }
 0x31f   :  { %682 = vmatmul.mubr.f32.vlgmr.msra.gmra.mxu1 %v398_v11 }
 0x3df   :  { %v488_v13 = vpop.f32.mrf.mxu1 }
 0x3e0   :  { %v489_v0 = vadd.f32 %v504_v12, %v488_v13 }
 0x3e1   :  { %v683_v14 = vpop.f32.mrf.mxu1 }
 0x3e2   :  { %492 = vst.msk [vmem:[%s1006_s11] sm:$0xff] %vm51_vm1, %v489_v0 }

</bundles_post_ra>
